<compile_context>
chip_gen: v5e
topology: v5e:2x2
jax: 0.10.0
libtpu: 0.0.40
codegen_flags: <defaults>
</compile_context>

<pallas_src>
import functools

import jax
import jax.numpy as jnp
from jax.experimental import pallas as pl
from jax.experimental.pallas import tpu as pltpu


# ---------------------------------------------------------------------------
# GPT-2 "gelu_new" (tanh approximation), dtype-generic so it can run in bf16 on
# v6e/v7x and in f32 on v5e.
# ---------------------------------------------------------------------------
def _gelu_new(x):
    dt = x.dtype
    c = jnp.asarray(0.7978845608028654, dt)      # sqrt(2/pi)
    a = jnp.asarray(0.044715, dt)
    half = jnp.asarray(0.5, dt)
    one = jnp.asarray(1.0, dt)
    return half * x * (one + jnp.tanh(c * (x + a * (x * x * x))))


def _round_up(x, m):
    return ((x + m - 1) // m) * m


def _vmem_budget_bytes():
    """~75% of physical per-core VMEM (64 MiB on v7x, 128 MiB on v5e/v6e)."""
    try:
        cap = int(pltpu.get_tpu_info().vmem_capacity_bytes)
    except Exception:
        cap = 64 * 1024 * 1024                    # conservative (v7x-sized) fallback
    return int(cap * 0.75)


def _act_dtype_for_chip():
    """bf16 gelu only where the VPU/EUP natively support bf16 (v6e / v7x)."""
    try:
        kind = jax.devices()[0].device_kind.lower()
    except Exception:
        return jnp.float32
    if ("v6" in kind) or ("v7" in kind) or ("7x" in kind):
        return jnp.bfloat16
    return jnp.float32                            # v5e: no bf16 VALU/EUP, keep f32


# ---------------------------------------------------------------------------
# Tile selection (budgeted against per-chip VMEM).
# ---------------------------------------------------------------------------
def _pick_tm(M, max_tm):
    """Padding-minimizing row tile, rounded to 16 (bf16 sublane packing)."""
    if M <= max_tm:
        return _round_up(M, 16)
    n_tiles = -(-M // max_tm)
    return _round_up(-(-M // n_tiles), 16)


def _fast_path_bytes(tm, E, I, wsize, xsize, osize):
    weights = 2 * (2 * E * I) * wsize             # W_fc + W_proj, double-buffered
    io = 2 * tm * E * (xsize + osize)             # x / out tiles, double-buffered
    biases = 2 * (I + E) * 4
    inter = tm * I * (4 + wsize)                  # f32 intermediate + bf16 copy
    return weights + io + biases + inter


def _tiled_bytes(tm, ti, E, wsize, xsize, osize):
    weights = 2 * (2 * E * ti) * wsize
    io = 2 * tm * E * (xsize + osize)
    biases = 2 * (ti + E) * 4
    acc = tm * E * 4
    inter = tm * ti * (4 + wsize)
    return weights + io + biases + acc + inter


def _choose_config(M, E, I, budget, wsize, xsize, osize):
    """Returns (tm, ti).  ti == I means the weights-resident 1-D-grid fast path."""
    ti_cands = [c for c in (1024, 512, 256, 128) if I % c == 0] or [I]
    for max_tm in (1024, 512, 384, 256, 128, 64, 32, 16):
        tm = _pick_tm(M, max_tm)
        if _fast_path_bytes(tm, E, I, wsize, xsize, osize) <= budget:
            return tm, I
        for ti in ti_cands:
            if _tiled_bytes(tm, ti, E, wsize, xsize, osize) <= budget:
                return tm, ti
    return _pick_tm(M, 16), ti_cands[-1]


# ---------------------------------------------------------------------------
# Kernels.
# ---------------------------------------------------------------------------
def _mlp_kernel_resident(x_ref, w_fc_ref, b_fc_ref, w_proj_ref, b_proj_ref,
                         o_ref, *, act_dtype):
    # Weights are grid-invariant (fetched once); single fused step per row tile.
    h = jnp.dot(x_ref[...], w_fc_ref[...], preferred_element_type=jnp.float32)
    h = _gelu_new((h + b_fc_ref[...]).astype(act_dtype))
    y = jnp.dot(h.astype(w_proj_ref.dtype), w_proj_ref[...],
                preferred_element_type=jnp.float32)
    o_ref[...] = (y + b_proj_ref[...]).astype(o_ref.dtype)


def _mlp_kernel_tiled(x_ref, w_fc_ref, b_fc_ref, w_proj_ref, b_proj_ref,
                      o_ref, acc_ref, *, act_dtype):
    # Grid = (M tiles "parallel", I tiles "arbitrary"); acc_ref persists over k.
    k = pl.program_id(1)

    @pl.when(k == 0)
    def _():
        acc_ref[...] = jnp.zeros_like(acc_ref)

    h = jnp.dot(x_ref[...], w_fc_ref[...], preferred_element_type=jnp.float32)
    h = _gelu_new((h + b_fc_ref[...]).astype(act_dtype))
    acc_ref[...] += jnp.dot(h.astype(w_proj_ref.dtype), w_proj_ref[...],
                            preferred_element_type=jnp.float32)

    @pl.when(k == pl.num_programs(1) - 1)
    def _():
        o_ref[...] = (acc_ref[...] + b_proj_ref[...]).astype(o_ref.dtype)


# ---------------------------------------------------------------------------
# Wrapper.
# ---------------------------------------------------------------------------
def gpt2_mlp(hidden_states, w_fc, b_fc, w_proj, b_proj, *,
             compute_dtype=jnp.bfloat16, act_dtype=None, tm=None, ti=None):
    """Fused GPT2 MLP: gelu_new(x @ W_fc + b_fc) @ W_proj + b_proj.

    hidden_states: (B, S, E); w_fc: (E, I); b_fc: (I,); w_proj: (I, E); b_proj: (E,).
    Pass the weight matrices already in `compute_dtype` (bf16) to avoid a per-call cast.
    """
    B, S, E = hidden_states.shape
    I = w_fc.shape[1]
    M = B * S
    out_dtype = hidden_states.dtype

    if act_dtype is None:
        act_dtype = _act_dtype_for_chip()

    wsize = jnp.dtype(compute_dtype).itemsize
    xsize = jnp.dtype(compute_dtype).itemsize
    osize = jnp.dtype(out_dtype).itemsize
    budget = _vmem_budget_bytes()

    if tm is None or ti is None:
        auto_tm, auto_ti = _choose_config(M, E, I, budget, wsize, xsize, osize)
        tm = auto_tm if tm is None else tm
        ti = auto_ti if ti is None else ti
    resident = (ti == I)

    Mp = _round_up(M, tm)
    x2d = hidden_states.reshape(M, E)
    if Mp > M:
        x2d = jnp.pad(x2d, ((0, Mp - M), (0, 0)))
    if x2d.dtype != compute_dtype:
        x2d = x2d.astype(compute_dtype)

    # Only cast weights if the caller didn't keep them persistently in compute_dtype.
    w_fc_c = w_fc if w_fc.dtype == compute_dtype else w_fc.astype(compute_dtype)
    w_proj_c = w_proj if w_proj.dtype == compute_dtype else w_proj.astype(compute_dtype)
    b_fc2 = b_fc.reshape(1, I).astype(jnp.float32)
    b_proj2 = b_proj.reshape(1, E).astype(jnp.float32)

    n_row_tiles = Mp // tm
    weight_passes = 1 if resident else n_row_tiles
    cost = pl.CostEstimate(
        flops=int(4 * Mp * E * I),
        transcendentals=int(Mp * I),
        bytes_accessed=int(Mp * E * (xsize + osize)
                           + weight_passes * 2 * E * I * wsize
                           + (I + E) * 4),
    )
    cparams = pltpu.CompilerParams(
        dimension_semantics=("parallel",) if resident else ("parallel", "arbitrary"),
        vmem_limit_bytes=int(budget),
    )

    if resident:
        kernel = functools.partial(_mlp_kernel_resident, act_dtype=act_dtype)
        grid_spec = pltpu.PrefetchScalarGridSpec(
            num_scalar_prefetch=0,
            grid=(n_row_tiles,),
            in_specs=[
                pl.BlockSpec((tm, E), lambda i: (i, 0)),     # x rows tiled
                pl.BlockSpec((E, I), lambda i: (0, 0)),      # W_fc, resident
                pl.BlockSpec((1, I), lambda i: (0, 0)),      # b_fc, resident
                pl.BlockSpec((I, E), lambda i: (0, 0)),      # W_proj, resident
                pl.BlockSpec((1, E), lambda i: (0, 0)),      # b_proj, resident
            ],
            out_specs=pl.BlockSpec((tm, E), lambda i: (i, 0)),
            scratch_shapes=[],
        )
    else:
        kernel = functools.partial(_mlp_kernel_tiled, act_dtype=act_dtype)
        grid_spec = pltpu.PrefetchScalarGridSpec(
            num_scalar_prefetch=0,
            grid=(n_row_tiles, I // ti),
            in_specs=[
                pl.BlockSpec((tm, E), lambda i, k: (i, 0)),  # x rows tiled
                pl.BlockSpec((E, ti), lambda i, k: (0, k)),  # W_fc column chunk
                pl.BlockSpec((1, ti), lambda i, k: (0, k)),  # b_fc chunk
                pl.BlockSpec((ti, E), lambda i, k: (k, 0)),  # W_proj row chunk
                pl.BlockSpec((1, E), lambda i, k: (0, 0)),   # b_proj, grid-invariant
            ],
            out_specs=pl.BlockSpec((tm, E), lambda i, k: (i, 0)),
            scratch_shapes=[pltpu.VMEM((tm, E), jnp.float32)],
        )

    out2d = pl.pallas_call(
        kernel,
        out_shape=jax.ShapeDtypeStruct((Mp, E), out_dtype),
        grid_spec=grid_spec,
        compiler_params=cparams,
        cost_estimate=cost,
    )(x2d, w_fc_c, b_fc2, w_proj_c, b_proj2)

    if Mp > M:
        out2d = out2d[:M]
    return out2d.reshape(B, S, E)


def gpt2_mlp_reference(hidden_states, w_fc, b_fc, w_proj, b_proj):
    h = hidden_states.astype(jnp.float32) @ w_fc.astype(jnp.float32) + b_fc
    h = _gelu_new(h)
    return h @ w_proj.astype(jnp.float32) + b_proj


if __name__ == "__main__":
    # Small shapes consistent with GPT2MLP: embed_dim=32, intermediate=4*32=128,
    # batch=2, seq=8.
    B, S, E = 2, 8, 32
    I = 4 * E

    key = jax.random.PRNGKey(0)
    k_x, k_wfc, k_bfc, k_wproj, k_bproj = jax.random.split(key, 5)

    x = jax.random.normal(k_x, (B, S, E), dtype=jnp.float32)
    # Conv1D init: weight ~ N(0, 0.02); small biases.
    w_fc = 0.02 * jax.random.normal(k_wfc, (E, I), dtype=jnp.float32)
    b_fc = 0.01 * jax.random.normal(k_bfc, (I,), dtype=jnp.float32)
    w_proj = 0.02 * jax.random.normal(k_wproj, (I, E), dtype=jnp.float32)
    b_proj = 0.01 * jax.random.normal(k_bproj, (E,), dtype=jnp.float32)

    # Keep the matmul weights persistently in bf16 (no per-call f32->bf16 cast).
    w_fc_bf16 = w_fc.astype(jnp.bfloat16)
    w_proj_bf16 = w_proj.astype(jnp.bfloat16)

    out = gpt2_mlp(x, w_fc_bf16, b_fc, w_proj_bf16, b_proj)
    out = jax.block_until_ready(out)

    ref = gpt2_mlp_reference(x, w_fc, b_fc, w_proj, b_proj)
    assert out.shape == (B, S, E)
    # Internal matmuls (and gelu on v6e/v7x) run in bf16 with f32 accumulation;
    # compare against the f32 reference with correspondingly relaxed tolerance.
    assert jnp.allclose(out, ref, atol=2e-2, rtol=2e-2), "mismatch vs reference"

    print("KERNEL_OK")
</pallas_src>

<mosaic_0001>
module attributes {stable_mosaic.version = 11 : i64} {
  func.func @_mlp_kernel_resident(%arg0: i32, %arg1: memref<16x32xbf16, #tpu.memory_space<vmem>>, %arg2: memref<32x128xbf16, #tpu.memory_space<vmem>>, %arg3: memref<1x128xf32, #tpu.memory_space<vmem>>, %arg4: memref<128x32xbf16, #tpu.memory_space<vmem>>, %arg5: memref<1x32xf32, #tpu.memory_space<vmem>>, %arg6: memref<16x32xf32, #tpu.memory_space<vmem>>) attributes {dimension_semantics = [#tpu.dimension_semantics<parallel>], iteration_bounds = array<i64: 1>, scalar_prefetch = 0 : i64, scratch_operands = 0 : i64, tpu.core_type = #tpu.core_type<tc>, window_params = [{transform_indices = @transform_0, window_bounds = array<i64: 16, 32>}, {pipeline_mode = #tpu.pipeline_mode<synchronous>, transform_indices = @transform_1, window_bounds = array<i64: 32, 128>}, {pipeline_mode = #tpu.pipeline_mode<synchronous>, transform_indices = @transform_2, window_bounds = array<i64: 1, 128>}, {pipeline_mode = #tpu.pipeline_mode<synchronous>, transform_indices = @transform_3, window_bounds = array<i64: 128, 32>}, {pipeline_mode = #tpu.pipeline_mode<synchronous>, transform_indices = @transform_4, window_bounds = array<i64: 1, 32>}, {transform_indices = @transform_5, window_bounds = array<i64: 16, 32>}]} {
    %c0 = arith.constant 0 : index
    %c0_0 = arith.constant 0 : index
    %0 = vector.load %arg1[%c0, %c0_0] : memref<16x32xbf16, #tpu.memory_space<vmem>>, vector<16x32xbf16>
    %c0_1 = arith.constant 0 : index
    %c0_2 = arith.constant 0 : index
    %1 = vector.load %arg2[%c0_1, %c0_2] : memref<32x128xbf16, #tpu.memory_space<vmem>>, vector<32x128xbf16>
    %cst = arith.constant dense<0.000000e+00> : vector<16x128xf32>
    %2 = tpu.matmul %0, %1, %cst {dimension_numbers = #tpu.dot_dimension_numbers<[1], [0], [0], [1], [0, 0, 1, 1], [], []>} : vector<16x32xbf16>, vector<32x128xbf16>, vector<16x128xf32> -> vector<16x128xf32>
    %c0_3 = arith.constant 0 : index
    %c0_4 = arith.constant 0 : index
    %3 = vector.load %arg3[%c0_3, %c0_4] : memref<1x128xf32, #tpu.memory_space<vmem>>, vector<1x128xf32>
    %4 = vector.broadcast %3 : vector<1x128xf32> to vector<16x128xf32>
    %5 = arith.addf %2, %4 : vector<16x128xf32>
    %cst_5 = arith.constant 5.000000e-01 : f32
    %6 = vector.broadcast %cst_5 : f32 to vector<16x128xf32>
    %7 = arith.mulf %6, %5 : vector<16x128xf32>
    %8 = arith.mulf %5, %5 : vector<16x128xf32>
    %9 = arith.mulf %8, %5 : vector<16x128xf32>
    %cst_6 = arith.constant 4.471500e-02 : f32
    %10 = vector.broadcast %cst_6 : f32 to vector<16x128xf32>
    %11 = arith.mulf %10, %9 : vector<16x128xf32>
    %12 = arith.addf %5, %11 : vector<16x128xf32>
    %cst_7 = arith.constant 0.797884583 : f32
    %13 = vector.broadcast %cst_7 : f32 to vector<16x128xf32>
    %14 = arith.mulf %13, %12 : vector<16x128xf32>
    %15 = math.tanh %14 : vector<16x128xf32>
    %cst_8 = arith.constant 1.000000e+00 : f32
    %16 = vector.broadcast %cst_8 : f32 to vector<16x128xf32>
    %17 = arith.addf %16, %15 : vector<16x128xf32>
    %18 = arith.mulf %7, %17 : vector<16x128xf32>
    %19 = arith.truncf %18 : vector<16x128xf32> to vector<16x128xbf16>
    %c0_9 = arith.constant 0 : index
    %c0_10 = arith.constant 0 : index
    %20 = vector.load %arg4[%c0_9, %c0_10] : memref<128x32xbf16, #tpu.memory_space<vmem>>, vector<128x32xbf16>
    %cst_11 = arith.constant dense<0.000000e+00> : vector<16x32xf32>
    %21 = tpu.matmul %19, %20, %cst_11 {dimension_numbers = #tpu.dot_dimension_numbers<[1], [0], [0], [1], [0, 0, 1, 1], [], []>} : vector<16x128xbf16>, vector<128x32xbf16>, vector<16x32xf32> -> vector<16x32xf32>
    %c0_12 = arith.constant 0 : index
    %c0_13 = arith.constant 0 : index
    %22 = vector.load %arg5[%c0_12, %c0_13] : memref<1x32xf32, #tpu.memory_space<vmem>>, vector<1x32xf32>
    %23 = vector.broadcast %22 : vector<1x32xf32> to vector<16x32xf32>
    %24 = arith.addf %21, %23 : vector<16x32xf32>
    %c0_14 = arith.constant 0 : index
    %c0_15 = arith.constant 0 : index
    %25 = vector.load %arg6[%c0_14, %c0_15] : memref<16x32xf32, #tpu.memory_space<vmem>>, vector<16x32xf32>
    tpu.vector_store %arg6[%c0_14, %c0_15], %24 {strides = array<i32>} : memref<16x32xf32, #tpu.memory_space<vmem>>, vector<16x32xf32>,
    return
  }
  func.func @transform_0(%arg0: i32) -> (i32, i32) {
    %c0_i32 = arith.constant 0 : i32
    %c0_i32_0 = arith.constant 0 : i32
    return %arg0, %c0_i32 : i32, i32
  }
  func.func @transform_1(%arg0: i32) -> (i32, i32) {
    %c0_i32 = arith.constant 0 : i32
    %c0_i32_0 = arith.constant 0 : i32
    %c0_i32_1 = arith.constant 0 : i32
    return %c0_i32, %c0_i32_0 : i32, i32
  }
  func.func @transform_2(%arg0: i32) -> (i32, i32) {
    %c0_i32 = arith.constant 0 : i32
    %c0_i32_0 = arith.constant 0 : i32
    %c0_i32_1 = arith.constant 0 : i32
    return %c0_i32, %c0_i32_0 : i32, i32
  }
  func.func @transform_3(%arg0: i32) -> (i32, i32) {
    %c0_i32 = arith.constant 0 : i32
    %c0_i32_0 = arith.constant 0 : i32
    %c0_i32_1 = arith.constant 0 : i32
    return %c0_i32, %c0_i32_0 : i32, i32
  }
  func.func @transform_4(%arg0: i32) -> (i32, i32) {
    %c0_i32 = arith.constant 0 : i32
    %c0_i32_0 = arith.constant 0 : i32
    %c0_i32_1 = arith.constant 0 : i32
    return %c0_i32, %c0_i32_0 : i32, i32
  }
  func.func @transform_5(%arg0: i32) -> (i32, i32) {
    %c0_i32 = arith.constant 0 : i32
    %c0_i32_0 = arith.constant 0 : i32
    return %arg0, %c0_i32 : i32, i32
  }
}

</mosaic_0001>

<bundles_post_ra>
// kernel: tpu_custom_call.1
= control target key start
LH: loop header
LB: loop body
LE: loop exit
PB: predicated region body
PF: predicated region fallthrough
CT: control target
= control target key end

     0   :  { %s357_s0 = inlined_call_operand.vmem [shape: bf16[16,32], index: 0, kind: input, shape index: {}]   ;;  %s358_s1 = inlined_call_operand.vmem [shape: bf16[32,128], index: 1, kind: input, shape index: {}]   ;;  %s359_s2 = inlined_call_operand.vmem [shape: f32[1,128], index: 2, kind: input, shape index: {}]   ;;  %s360_s3 = inlined_call_operand.vmem [shape: bf16[128,32], index: 3, kind: input, shape index: {}]   ;;  %s361_s4 = inlined_call_operand.vmem [shape: f32[1,32], index: 4, kind: input, shape index: {}]   ;;  %s362_s5 = inlined_call_operand.hbm [shape: f32[16,32], index: 5, kind: output, shape index: {}]  }
   0x1   :  { %v235_v0 = vld [vmem:[%s358_s1 + $0x8] sm:$0xff]  ;;  %v234_v1 = vld [vmem:[%s358_s1] sm:$0xff] }
   0x2   :  { %59 = vmatpush.bf16.msra.mxu0 %v235_v0 }
   0x3   :  { %10 = vsyncpa [#allocation3], 0  ;;  %v233_v2 = vld [vmem:[%s357_s0] sm:$0xff]  ;;  %vm49_vm0 = vcmask 261120   ;;  %v243_v3 = vld [vmem:[%s360_s3 + $0x38] sm:$0xff]  ;;  %s279_s15 = smov [#allocation2]  }
   0x4   :  { %154 = vmatpush.bf16.msra.mxu1 %v243_v3  ;;  %v242_v4 = vld [vmem:[%s360_s3 + $0x30] sm:$0xff]  ;;  %v241_v5 = vld [vmem:[%s360_s3 + $0x28] sm:$0xff]  ;;  %v240_v6 = vld [vmem:[%s360_s3 + $0x20] sm:$0xff]  ;;  %s174_s16 = sshll.u32 %s279_s15, 4  ;;  %s176_s19 = sshll.u32 %s362_s5, 4  ;;  %s175_s16 = int_to_ptr.vmem [resolvable:$true] %s174_s16  ;;  %s177_s19 = int_to_ptr.hbm [resolvable:$true] %s176_s19 }
   0x5   :  { %v239_v7 = vld [vmem:[%s360_s3 + $0x18] sm:$0xff]  ;;  %v238_v8 = vld [vmem:[%s360_s3 + $0x10] sm:$0xff]  ;;  %v237_v9 = vld [vmem:[%s360_s3 + $0x8] sm:$0xff]  ;;  %s280_s20 = smov 128   ;;  %s281_s21 = smov 8  }
   0x6   :  { %60 = vmatpush.bf16.msra.mxu0 %v234_v1  ;;  %v236_v10 = vld [vmem:[%s360_s3] sm:$0xff] }
   0x7   :  { %v247_v11 = vld [vmem:[%s359_s2] ss:$0 sm:$0xff] }
   0x8   :  { %155 = vmatpush.bf16.msra.mxu1 %v242_v4  ;;  %v248_v35 = vld [vmem:[%s361_s4] ss:$0 sm:$0xff] }
   0x9   :  { %200 = vmatmul.msk.bf16.vlgmr.msra.gmra.mxu0 %vm49_vm0, %v233_v2 }
   0xc   :  { %156 = vmatpush.bf16.msra.mxu1 %v241_v5 }
  0x10   :  { %157 = vmatpush.bf16.msra.mxu1 %v240_v6 }
  0x14   :  { %158 = vmatpush.bf16.msra.mxu1 %v239_v7 }
  0x18   :  { %159 = vmatpush.bf16.msra.mxu1 %v238_v8 }
  0x1c   :  { %160 = vmatpush.bf16.msra.mxu1 %v237_v9 }
  0x20   :  { %161 = vmatpush.bf16.msra.mxu1 %v236_v10 }
  0x86   :  { %v62_v12 = vpop.f32.mrf.mxu0 }
  0x87   :  { %v63_v13 = vadd.f32 %v247_v11, %v62_v12 }
  0x89   :  { %v69_v14 = vmul.f32 %v63_v13, %v63_v13  ;;  %v67_v29 = vmul.f32 0.5, %v63_v13 }
  0x8b   :  { %v71_v15 = vmul.f32 %v69_v14, %v63_v13 }
  0x8d   :  { %v73_v16 = vmul.f32 0.044715, %v71_v15 }
  0x8e   :  { %v64_v17 = vpop.f32.mrf.mxu0 }
  0x8f   :  { %v65_v18 = vadd.f32 %v247_v11, %v64_v17  ;;  %v75_v19 = vadd.f32 %v73_v16, %v63_v13 }
  0x91   :  { %v70_v20 = vmul.f32 %v65_v18, %v65_v18  ;;  %v77_v22 = vmul.f32 0.7978846, %v75_v19  ;;  %v68_v30 = vmul.f32 0.5, %v65_v18 }
  0x93   :  { %v72_v21 = vmul.f32 %v70_v20, %v65_v18  ;;  %249 = vtanh.f32 %v77_v22 }
  0x95   :  { %v74_v23 = vmul.f32 0.044715, %v72_v21 }
  0x97   :  { %v76_v24 = vadd.f32 %v74_v23, %v65_v18 }
  0x99   :  { %v78_v25 = vmul.f32 0.7978846, %v76_v24  ;;  %v250_v26 = vpop.eup %249 }
  0x9a   :  { %v81_v27 = vadd.f32 1.0, %v250_v26 }
  0x9b   :  { %251 = vtanh.f32 %v78_v25 }
  0x9c   :  { %v83_v32 = vmul.f32 %v81_v27, %v67_v29 }
  0xa1   :  { %v252_v28 = vpop.eup %251 }
  0xa2   :  { %v82_v31 = vadd.f32 1.0, %v252_v28 }
  0xa4   :  { %v84_v33 = vmul.f32 %v82_v31, %v68_v30 }
  0xa6   :  { %v85_v34 = vpack.c.bf16 %v84_v33, %v83_v32 }
  0xa8   :  { %162 = vmatmul.bf16.vlgmr.msra.gmra.mxu1 %v85_v34 }
 0x125   :  { %v163_v36 = vpop.f32.mrf.mxu1 }
 0x126   :  { %v164_v37 = vadd.f32 %v248_v35, %v163_v36 }
 0x128   :  { %168 = vst.msk [vmem:[#allocation2] sm:$0xff] %vm49_vm0, %v164_v37 }
 0x12d   :  { %v165_v38 = vpop.f32.mrf.mxu1 }
 0x12e   :  { %v166_v39 = vadd.f32 %v248_v35, %v165_v38 }
 0x130   :  { %169 = vst.msk [vmem:[#allocation2 + $0x8] sm:$0xff] %vm49_vm0, %v166_v39 }
 0x131   :  { %182 = dma.vmem_to_hbm [thread:$0]  %s175_s16, 256, %s177_s19, [#allocation3], %s280_s20, %s280_s20, %s281_s21  }
 0x132   :  { %277 = dma.done.wait [#allocation3], 256  }
 0x133   :  { %278 = vsyncadd [#allocation3], 4294967040 }
 0x134   :  { %187 = vsyncpa [#allocation3], 1 }

</bundles_post_ra>
